<compile_context>
chip_gen: v7x
topology: tpu7x:2x2x1
jax: 0.10.0
libtpu: 0.0.40
codegen_flags: <defaults>
</compile_context>

<pallas_src>
import functools

import jax
import jax.numpy as jnp
from jax import lax
from jax.experimental import pallas as pl
from jax.experimental.pallas import tpu as pltpu


def _infomax_kernel(x1_ref, x2_ref, out_ref,
                    gram_ref, ss1_ref, ss2_ref, *,
                    loss_weight, d_total, tile_k, ragged):
    """Grid axis 0 runs over D-tiles; accumulators live in VMEM scratch."""
    k = pl.program_id(0)

    @pl.when(k == 0)
    def _init():
        gram_ref[...] = jnp.zeros_like(gram_ref)
        ss1_ref[...] = jnp.zeros_like(ss1_ref)
        ss2_ref[...] = jnp.zeros_like(ss2_ref)

    x1 = x1_ref[...]                       # (B, TK), native dtype (f32 / bf16)
    x2 = x2_ref[...]                       # (B, TK)

    if ragged:
        # Last block overhangs D: out-of-bounds lanes hold unspecified data and
        # MUST be zeroed before they feed the sums / Gram.  One VPU compare +
        # two selects per step; only compiled in when D % TK != 0.
        col = lax.broadcasted_iota(jnp.int32, (1, tile_k), 1)
        valid = (k * tile_k + col) < d_total
        x1 = jnp.where(valid, x1, jnp.zeros((), x1.dtype))
        x2 = jnp.where(valid, x2, jnp.zeros((), x2.dtype))

    x1f = x1.astype(jnp.float32)
    x2f = x2.astype(jnp.float32)

    # Per-row partial sums of squares, accumulated in f32.
    ss1_ref[...] += jnp.sum(x1f * x1f, axis=1, keepdims=True)
    ss2_ref[...] += jnp.sum(x2f * x2f, axis=1, keepdims=True)

    # Unnormalized Gram partial: contract the tile axis of both operands on the
    # MXU (transposed-RHS dimension numbers, no explicit transpose of the
    # tile), accumulating in f32.
    gram_ref[...] += lax.dot_general(
        x1, x2, (((1,), (1,)), ((), ())),
        preferred_element_type=jnp.float32)

    @pl.when(k == pl.num_programs(0) - 1)
    def _finalize():
        b = gram_ref.shape[0]
        denom = float(b * b)
        rows = lax.broadcasted_iota(jnp.int32, (b, b), 0)
        cols = lax.broadcasted_iota(jnp.int32, (b, b), 1)
        eye = rows == cols

        n1 = jnp.sqrt(ss1_ref[...]) + 1e-10            # (B, 1) row norms of x1
        n2 = jnp.sqrt(ss2_ref[...]) + 1e-10            # (B, 1) row norms of x2
        # (1, B) row vector of x2 norms via a one-time masked sublane reduce
        # (no K=1 MXU outer product, no explicit transpose).
        n2_row = jnp.sum(jnp.where(eye, n2, jnp.float32(0.0)),
                         axis=0, keepdims=True)        # (1, B)

        # Normalize-then-matmul == matmul-then-divide-by-norm-outer-product.
        s = gram_ref[...] / (n1 * n2_row)              # (B, B), VPU broadcast

        # Ej = mean(s * eye); Em = mean(exp(s * (1 - eye))): the diagonal of
        # the latter contributes exp(0) = 1 per entry, so replace it directly.
        ej = jnp.sum(jnp.where(eye, s, jnp.float32(0.0))) / denom
        em = jnp.sum(jnp.where(eye, jnp.float32(1.0), jnp.exp(s))) / denom
        out_ref[0] = -(ej - jnp.log(em)) * loss_weight


def infomax_loss(x_stu, x_tea, loss_weight=1.0, tile_k=None):
    """InfoMax distillation loss.  x_stu, x_tea: (B, C, H, W) feature maps."""
    assert x_stu.ndim >= 4 and x_tea.ndim >= 4
    B = x_stu.shape[0]
    # Keep the native dtype end-to-end (no f32 upcast in the wrapper): for bf16
    # activations this halves the HBM traffic of a bandwidth-bound kernel.
    x1 = x_stu.reshape(B, -1)
    x2 = x_tea.reshape(B, -1)
    assert x1.shape == x2.shape, "student/teacher feature sizes must match"
    D = x1.shape[1]
    itemsize = x1.dtype.itemsize

    if tile_k is None:
        # Per-step VMEM estimate:
        #   2 inputs x 2 pipeline buffers of (B, tile_k) in the native dtype
        # + ~3 f32 (B, tile_k) compute temporaries (casts + products)
        # + the (B, B) f32 gram accumulator.
        # Pick the largest lane-aligned tile that fits a ~20 MiB budget: with
        # small typical B this is step-overhead-, not HBM-, bound, so bigger
        # tiles directly amortize the ~0.35 us fixed per-grid-step cost.
        budget = 20 * 1024 * 1024
        per_col = B * (4 * itemsize + 3 * 4)
        fit = (budget - 4 * B * B) // max(1, per_col)
        tile_k = max(128, (fit // 128) * 128)
    else:
        tile_k = max(128, (tile_k // 128) * 128)       # lane-aligned

    if tile_k >= D:
        # Whole feature axis fits in one step: a block equal to the full dim is
        # always legal (no (8,128) constraint, no tail masking needed).
        tile_k = D
    num_k = pl.cdiv(D, tile_k)
    ragged = (D % tile_k) != 0

    # Explicit scoped-VMEM request so the chosen tile is valid on every
    # generation (v5e default scoped limit is only 16 MiB); never above v7x's
    # 64 MiB physical VMEM per TensorCore.
    est = (4 * B * tile_k * itemsize          # 2 inputs x 2 pipeline buffers
           + 3 * B * tile_k * 4               # f32 per-tile temporaries
           + 4 * B * B + 4096)                # gram + small accumulators
    vmem_limit = int(min(max(32 * 1024 * 1024, est + est // 2),
                         60 * 1024 * 1024))

    kernel = functools.partial(
        _infomax_kernel,
        loss_weight=float(loss_weight),
        d_total=int(D), tile_k=int(tile_k), ragged=bool(ragged))

    out = pl.pallas_call(
        kernel,
        out_shape=jax.ShapeDtypeStruct((1,), jnp.float32),
        grid_spec=pltpu.PrefetchScalarGridSpec(
            num_scalar_prefetch=0,
            grid=(num_k,),
            in_specs=[
                pl.BlockSpec((B, tile_k), lambda k: (0, k)),
                pl.BlockSpec((B, tile_k), lambda k: (0, k)),
            ],
            out_specs=pl.BlockSpec(memory_space=pltpu.MemorySpace.SMEM),
            scratch_shapes=[
                pltpu.VMEM((B, B), jnp.float32),   # Gram accumulator
                pltpu.VMEM((B, 1), jnp.float32),   # sum(x1^2) per row
                pltpu.VMEM((B, 1), jnp.float32),   # sum(x2^2) per row
            ],
        ),
        compiler_params=pltpu.CompilerParams(
            # the single grid axis is the D reduction -> resident accumulators
            dimension_semantics=("arbitrary",),
            vmem_limit_bytes=vmem_limit,
        ),
    )(x1, x2)
    return out[0]


def _reference_infomax(x_stu, x_tea, loss_weight=1.0):
    """Pure-JAX reference (f32, HIGHEST-precision matmul) for validation."""
    B = x_stu.shape[0]
    x1 = x_stu.reshape(B, -1).astype(jnp.float32)
    x2 = x_tea.reshape(B, -1).astype(jnp.float32)
    x1 = x1 / (jnp.linalg.norm(x1, axis=1, keepdims=True) + 1e-10)
    x2 = x2 / (jnp.linalg.norm(x2, axis=1, keepdims=True) + 1e-10)
    s = jnp.matmul(x1, x2.T, precision=lax.Precision.HIGHEST)
    eye = jnp.eye(B, dtype=jnp.float32)
    ej = jnp.mean(s * eye)
    em = jnp.mean(jnp.exp(s * (1.0 - eye)))
    return -(ej - jnp.log(em)) * loss_weight


if __name__ == "__main__":
    # Module has no learnable parameters; deterministic hyperparameter only.
    loss_weight = 1.0
    k1, k2, k3, k4 = jax.random.split(jax.random.PRNGKey(0), 4)

    # Case 1: default auto-tiling (D = 4*16*16 = 1024 -> single grid step).
    x_stu = jax.random.normal(k1, (2, 4, 16, 16), dtype=jnp.float32)
    x_tea = jax.random.normal(k2, (2, 4, 16, 16), dtype=jnp.float32)
    loss = jax.block_until_ready(infomax_loss(x_stu, x_tea, loss_weight))
    ref = jax.block_until_ready(_reference_infomax(x_stu, x_tea, loss_weight))
    assert jnp.allclose(loss, ref, rtol=1e-5, atol=1e-5), (loss, ref)

    # Case 2: forced small tile over a non-aligned D (= 3*13*16 = 624) with
    # tile_k=256 -> 3 reduction steps, ragged tail of 112 valid lanes:
    # exercises the streaming accumulators and the in-kernel lane mask.
    y_stu = jax.random.normal(k3, (2, 3, 13, 16), dtype=jnp.float32)
    y_tea = jax.random.normal(k4, (2, 3, 13, 16), dtype=jnp.float32)
    loss2 = jax.block_until_ready(
        infomax_loss(y_stu, y_tea, loss_weight, tile_k=256))
    ref2 = jax.block_until_ready(_reference_infomax(y_stu, y_tea, loss_weight))
    assert jnp.allclose(loss2, ref2, rtol=1e-5, atol=1e-5), (loss2, ref2)

    print("KERNEL_OK")
</pallas_src>

<mosaic_0001>
module attributes {stable_mosaic.version = 11 : i64} {
  func.func @_infomax_kernel(%arg0: i32, %arg1: memref<2x1024xf32, #tpu.memory_space<vmem>>, %arg2: memref<2x1024xf32, #tpu.memory_space<vmem>>, %arg3: memref<1xf32, #tpu.memory_space<smem>>, %arg4: memref<2x2xf32, #tpu.memory_space<vmem>>, %arg5: memref<2x1xf32, #tpu.memory_space<vmem>>, %arg6: memref<2x1xf32, #tpu.memory_space<vmem>>) attributes {dimension_semantics = [#tpu.dimension_semantics<arbitrary>], iteration_bounds = array<i64: 1>, scalar_prefetch = 0 : i64, scratch_operands = 3 : i64, tpu.core_type = #tpu.core_type<tc>, window_params = [{transform_indices = @transform_0, window_bounds = array<i64: 2, 1024>}, {transform_indices = @transform_1, window_bounds = array<i64: 2, 1024>}, {transform_indices = @transform_2, window_bounds = array<i64: 1>}]} {
    %c0_i32 = arith.constant 0 : i32
    %0 = arith.cmpi eq, %arg0, %c0_i32 : i32
    %1 = arith.extui %0 : i1 to i32
    %c0_i32_0 = arith.constant 0 : i32
    %2 = arith.cmpi ne, %1, %c0_i32_0 : i32
    scf.if %2 {
      %cst_20 = arith.constant 0.000000e+00 : f32
      %24 = vector.broadcast %cst_20 : f32 to vector<2x2xf32>
      %c0_21 = arith.constant 0 : index
      %c0_22 = arith.constant 0 : index
      %25 = vector.load %arg4[%c0_21, %c0_22] : memref<2x2xf32, #tpu.memory_space<vmem>>, vector<2x2xf32>
      tpu.vector_store %arg4[%c0_21, %c0_22], %24 {strides = array<i32>} : memref<2x2xf32, #tpu.memory_space<vmem>>, vector<2x2xf32>,
      %cst_23 = arith.constant 0.000000e+00 : f32
      %26 = vector.broadcast %cst_23 : f32 to vector<2x1xf32>
      %c0_24 = arith.constant 0 : index
      %c0_25 = arith.constant 0 : index
      %27 = vector.load %arg5[%c0_24, %c0_25] : memref<2x1xf32, #tpu.memory_space<vmem>>, vector<2x1xf32>
      tpu.vector_store %arg5[%c0_24, %c0_25], %26 {strides = array<i32>} : memref<2x1xf32, #tpu.memory_space<vmem>>, vector<2x1xf32>,
      %cst_26 = arith.constant 0.000000e+00 : f32
      %28 = vector.broadcast %cst_26 : f32 to vector<2x1xf32>
      %c0_27 = arith.constant 0 : index
      %c0_28 = arith.constant 0 : index
      %29 = vector.load %arg6[%c0_27, %c0_28] : memref<2x1xf32, #tpu.memory_space<vmem>>, vector<2x1xf32>
      tpu.vector_store %arg6[%c0_27, %c0_28], %28 {strides = array<i32>} : memref<2x1xf32, #tpu.memory_space<vmem>>, vector<2x1xf32>,
    } else {
    }
    %c0 = arith.constant 0 : index
    %c0_1 = arith.constant 0 : index
    %3 = vector.load %arg1[%c0, %c0_1] : memref<2x1024xf32, #tpu.memory_space<vmem>>, vector<2x1024xf32>
    %c0_2 = arith.constant 0 : index
    %c0_3 = arith.constant 0 : index
    %4 = vector.load %arg2[%c0_2, %c0_3] : memref<2x1024xf32, #tpu.memory_space<vmem>>, vector<2x1024xf32>
    %c0_4 = arith.constant 0 : index
    %c0_5 = arith.constant 0 : index
    %5 = vector.load %arg5[%c0_4, %c0_5] : memref<2x1xf32, #tpu.memory_space<vmem>>, vector<2x1xf32>
    %6 = arith.mulf %3, %3 : vector<2x1024xf32>
    %cst = arith.constant dense<0.000000e+00> : vector<2xf32>
    %7 = vector.multi_reduction <add>, %6, %cst [1] : vector<2x1024xf32> to vector<2xf32>
    %8 = vector.shape_cast %7 : vector<2xf32> to vector<2x1xf32>
    %9 = arith.addf %5, %8 : vector<2x1xf32>
    %c0_6 = arith.constant 0 : index
    %c0_7 = arith.constant 0 : index
    %10 = vector.load %arg5[%c0_6, %c0_7] : memref<2x1xf32, #tpu.memory_space<vmem>>, vector<2x1xf32>
    tpu.vector_store %arg5[%c0_6, %c0_7], %9 {strides = array<i32>} : memref<2x1xf32, #tpu.memory_space<vmem>>, vector<2x1xf32>,
    %c0_8 = arith.constant 0 : index
    %c0_9 = arith.constant 0 : index
    %11 = vector.load %arg6[%c0_8, %c0_9] : memref<2x1xf32, #tpu.memory_space<vmem>>, vector<2x1xf32>
    %12 = arith.mulf %4, %4 : vector<2x1024xf32>
    %cst_10 = arith.constant dense<0.000000e+00> : vector<2xf32>
    %13 = vector.multi_reduction <add>, %12, %cst_10 [1] : vector<2x1024xf32> to vector<2xf32>
    %14 = vector.shape_cast %13 : vector<2xf32> to vector<2x1xf32>
    %15 = arith.addf %11, %14 : vector<2x1xf32>
    %c0_11 = arith.constant 0 : index
    %c0_12 = arith.constant 0 : index
    %16 = vector.load %arg6[%c0_11, %c0_12] : memref<2x1xf32, #tpu.memory_space<vmem>>, vector<2x1xf32>
    tpu.vector_store %arg6[%c0_11, %c0_12], %15 {strides = array<i32>} : memref<2x1xf32, #tpu.memory_space<vmem>>, vector<2x1xf32>,
    %c0_13 = arith.constant 0 : index
    %c0_14 = arith.constant 0 : index
    %17 = vector.load %arg4[%c0_13, %c0_14] : memref<2x2xf32, #tpu.memory_space<vmem>>, vector<2x2xf32>
    %cst_15 = arith.constant dense<0.000000e+00> : vector<2x2xf32>
    %18 = tpu.matmul %3, %4, %cst_15 {dimension_numbers = #tpu.dot_dimension_numbers<[1], [1], [0], [0], [0, 0, 1, 0], [], []>} : vector<2x1024xf32>, vector<2x1024xf32>, vector<2x2xf32> -> vector<2x2xf32>
    %19 = arith.addf %17, %18 : vector<2x2xf32>
    %c0_16 = arith.constant 0 : index
    %c0_17 = arith.constant 0 : index
    %20 = vector.load %arg4[%c0_16, %c0_17] : memref<2x2xf32, #tpu.memory_space<vmem>>, vector<2x2xf32>
    tpu.vector_store %arg4[%c0_16, %c0_17], %19 {strides = array<i32>} : memref<2x2xf32, #tpu.memory_space<vmem>>, vector<2x2xf32>,
    %c0_i32_18 = arith.constant 0 : i32
    %21 = arith.cmpi eq, %arg0, %c0_i32_18 : i32
    %22 = arith.extui %21 : i1 to i32
    %c0_i32_19 = arith.constant 0 : i32
    %23 = arith.cmpi ne, %22, %c0_i32_19 : i32
    scf.if %23 {
      %24 = tpu.iota {dimensions = array<i32: 0>} : vector<2x2xi32>
      %25 = tpu.iota {dimensions = array<i32: 1>} : vector<2x2xi32>
      %26 = arith.cmpi eq, %24, %25 : vector<2x2xi32>
      %c0_20 = arith.constant 0 : index
      %c0_21 = arith.constant 0 : index
      %27 = vector.load %arg5[%c0_20, %c0_21] : memref<2x1xf32, #tpu.memory_space<vmem>>, vector<2x1xf32>
      %28 = math.sqrt %27 : vector<2x1xf32>
      %cst_22 = arith.constant 1.000000e-10 : f32
      %29 = vector.broadcast %cst_22 : f32 to vector<2x1xf32>
      %30 = arith.addf %28, %29 : vector<2x1xf32>
      %c0_23 = arith.constant 0 : index
      %c0_24 = arith.constant 0 : index
      %31 = vector.load %arg6[%c0_23, %c0_24] : memref<2x1xf32, #tpu.memory_space<vmem>>, vector<2x1xf32>
      %32 = math.sqrt %31 : vector<2x1xf32>
      %cst_25 = arith.constant 1.000000e-10 : f32
      %33 = vector.broadcast %cst_25 : f32 to vector<2x1xf32>
      %34 = arith.addf %32, %33 : vector<2x1xf32>
      %cst_26 = arith.constant 0.000000e+00 : f32
      %35 = vector.shape_cast %34 : vector<2x1xf32> to vector<2x1xf32>
      %36 = vector.broadcast %35 : vector<2x1xf32> to vector<2x2xf32>
      %37 = vector.broadcast %cst_26 : f32 to vector<2x2xf32>
      %38 = arith.select %26, %36, %37 : vector<2x2xi1>, vector<2x2xf32>
      %cst_27 = arith.constant dense<0.000000e+00> : vector<2xf32>
      %39 = vector.multi_reduction <add>, %38, %cst_27 [0] : vector<2x2xf32> to vector<2xf32>
      %40 = vector.shape_cast %39 : vector<2xf32> to vector<1x2xf32>
      %c0_28 = arith.constant 0 : index
      %c0_29 = arith.constant 0 : index
      %41 = vector.load %arg4[%c0_28, %c0_29] : memref<2x2xf32, #tpu.memory_space<vmem>>, vector<2x2xf32>
      %42 = vector.broadcast %30 : vector<2x1xf32> to vector<2x2xf32>
      %43 = vector.broadcast %40 : vector<1x2xf32> to vector<2x2xf32>
      %44 = arith.mulf %42, %43 : vector<2x2xf32>
      %45 = arith.divf %41, %44 : vector<2x2xf32>
      %cst_30 = arith.constant 0.000000e+00 : f32
      %46 = vector.broadcast %cst_30 : f32 to vector<2x2xf32>
      %47 = arith.select %26, %45, %46 : vector<2x2xi1>, vector<2x2xf32>
      %48 = vector.shape_cast %47 : vector<2x2xf32> to vector<1x2x2xf32>
      %cst_31 = arith.constant dense<0.000000e+00> : vector<1xf32>
      %49 = vector.multi_reduction <add>, %48, %cst_31 [1, 2] : vector<1x2x2xf32> to vector<1xf32>
      %50 = vector.shape_cast %49 : vector<1xf32> to vector<1x1x1xf32>
      %51 = vector.extract %50[0, 0, 0] : f32 from vector<1x1x1xf32>
      %cst_32 = arith.constant 4.000000e+00 : f32
      %52 = arith.divf %51, %cst_32 : f32
      %53 = math.exp %45 : vector<2x2xf32>
      %cst_33 = arith.constant 1.000000e+00 : f32
      %54 = vector.broadcast %cst_33 : f32 to vector<2x2xf32>
      %55 = arith.select %26, %54, %53 : vector<2x2xi1>, vector<2x2xf32>
      %56 = vector.shape_cast %55 : vector<2x2xf32> to vector<1x2x2xf32>
      %cst_34 = arith.constant dense<0.000000e+00> : vector<1xf32>
      %57 = vector.multi_reduction <add>, %56, %cst_34 [1, 2] : vector<1x2x2xf32> to vector<1xf32>
      %58 = vector.shape_cast %57 : vector<1xf32> to vector<1x1x1xf32>
      %59 = vector.extract %58[0, 0, 0] : f32 from vector<1x1x1xf32>
      %cst_35 = arith.constant 4.000000e+00 : f32
      %60 = arith.divf %59, %cst_35 : f32
      %61 = math.log %60 : f32
      %62 = arith.subf %52, %61 : f32
      %cst_36 = arith.constant 0.000000e+00 : f32
      %63 = arith.subf %cst_36, %62 : f32
      %cst_37 = arith.constant 1.000000e+00 : f32
      %64 = arith.mulf %63, %cst_37 : f32
      %c0_38 = arith.constant 0 : index
      %65 = memref.load %arg3[%c0_38] : memref<1xf32, #tpu.memory_space<smem>>
      memref.store %64, %arg3[%c0_38] : memref<1xf32, #tpu.memory_space<smem>>
    } else {
    }
    return
  }
  func.func @transform_0(%arg0: i32) -> (i32, i32) {
    %c0_i32 = arith.constant 0 : i32
    %c0_i32_0 = arith.constant 0 : i32
    return %c0_i32, %arg0 : i32, i32
  }
  func.func @transform_1(%arg0: i32) -> (i32, i32) {
    %c0_i32 = arith.constant 0 : i32
    %c0_i32_0 = arith.constant 0 : i32
    return %c0_i32, %arg0 : i32, i32
  }
  func.func @transform_2(%arg0: i32) -> i32 {
    %c0_i32 = arith.constant 0 : i32
    %c0_i32_0 = arith.constant 0 : i32
    return %c0_i32 : i32
  }
}

</mosaic_0001>

<bundles_post_ra>
// kernel: tpu_custom_call.1
= control target key start
LH: loop header
LB: loop body
LE: loop exit
PB: predicated region body
PF: predicated region fallthrough
CT: control target
= control target key end

     0   :  { %7 = vsyncpa [#allocation6], 0  ;;  %s880_s0 = inlined_call_operand.hbm [shape: f32[2,1024], index: 0, kind: input, shape index: {}]   ;;  %s881_s1 = inlined_call_operand.hbm [shape: f32[2,1024], index: 1, kind: input, shape index: {}]   ;;  %s882_s2 = inlined_call_operand.hbm [shape: f32[1], index: 2, kind: output, shape index: {}]  }
   0x1   :  { %8 = vsyncpa [#allocation9], 0 }
   0x2   :  { %9 = vsyncpa [#allocation7], 0  ;;  %s744_s9 = smov [#allocation5]   ;;  %s745_s11 = smov [#allocation8]  }
   0x3   :  { %s16_s10 = sshll.u32 %s744_s9, 4  ;;  %s26_s12 = sshll.u32 %s745_s11, 4  ;;  %s17_s10 = int_to_ptr.vmem [resolvable:$true] %s16_s10  ;;  %s27_s12 = int_to_ptr.vmem [resolvable:$true] %s26_s12 }
   0x4   :  { %s684_s15 = scalar_lea.hbm %s880_s0, 256 }
   0x5   :  { %p685_p0 = scmp.ne.s32.totalorder %s880_s0, %s684_s15  ;;  %p688_p1 = scmp.lt.u32.totalorder %s684_s15, %s880_s0 }
   0x7   :  { %p690_p2 = pnand %p688_p1, %p685_p0 }
   0x9   :  { %693 = shalt.err (!%p690_p2)
}
   0xa   :  { %s694_s20 = scalar_lea.vmem %s17_s10, 256  ;;  %p699_p4 = scmp.lt.s32.totalorder %s17_s10, %s17_s10 }
   0xb   :  { %p695_p3 = scmp.ne.s32.totalorder %s17_s10, %s694_s20  ;;  %p700_p5 = scmp.lt.s32.totalorder %s694_s20, %s694_s20 }
   0xd   :  { %p701_p6 = por %p700_p5, %p699_p4 }
   0xf   :  { %p702_p7 = pnand %p701_p6, %p695_p3 }
  0x11   :  { %705 = shalt.err (!%p702_p7)
}
  0x12   :  { %19 = dma.hbm_to_vmem [thread:$0]  %s880_s0, 256, %s17_s10, [#allocation6]  }
  0x13   :  { %s706_s25 = scalar_lea.hbm %s881_s1, 256 }
  0x14   :  { %p707_p8 = scmp.ne.s32.totalorder %s881_s1, %s706_s25  ;;  %p710_p9 = scmp.lt.u32.totalorder %s706_s25, %s881_s1 }
  0x16   :  { %p712_p10 = pnand %p710_p9, %p707_p8 }
  0x18   :  { %715 = shalt.err (!%p712_p10)
}
  0x19   :  { %s716_s30 = scalar_lea.vmem %s27_s12, 256  ;;  %p721_p12 = scmp.lt.s32.totalorder %s27_s12, %s27_s12 }
  0x1a   :  { %p717_p11 = scmp.ne.s32.totalorder %s27_s12, %s716_s30  ;;  %p722_p13 = scmp.lt.s32.totalorder %s716_s30, %s716_s30 }
  0x1c   :  { %p723_p0 = por %p722_p13, %p721_p12 }
  0x1e   :  { %p724_p1 = pnand %p723_p0, %p717_p11 }
  0x20   :  { %727 = shalt.err (!%p724_p1)
}
  0x21   :  { %29 = dma.hbm_to_vmem [thread:$0]  %s881_s1, 256, %s27_s12, [#allocation9]  }
  0x22   :  { %738 = dma.done.wait [#allocation6], 256  }
  0x23   :  { %739 = vsyncadd [#allocation6], 4294967040 }
  0x24   :  { %740 = dma.done.wait [#allocation9], 256  }
  0x25   :  { %741 = vsyncadd [#allocation9], 4294967040  ;;  %v58_v0 = vlaneseq  ;;  %v746_v1 = vmov 1983009808   ;;  %vm42_vm0 = vcmask 1024   ;;  %v747_v4 = vmov 0.0  }
  0x26   :  { %v56_v2 = vunpack.c.l.s4 %v746_v1  ;;  %44 = vst.msk [vmem:[#allocation4] sm:$0x3] %vm42_vm0, %v747_v4  ;;  %43 = vst.msk [vmem:[#allocation3] sm:$0x3] %vm42_vm0, %v747_v4  ;;  %v47_v7 = vld [vmem:[#allocation8] sm:$0xff]  ;;  %v799_v8 = vld [vmem:[#allocation8 + $0x8] sm:$0xff] }
  0x27   :  { %v790_v3 = vshrl.u32 %v58_v0, 7  ;;  %v801_v9 = vld [vmem:[#allocation5] sm:$0xff]  ;;  %v118_v10 = vmul.f32 %v47_v7, %v47_v7  ;;  %v119_v11 = vmul.f32 %v799_v8, %v799_v8  ;;  %v805_v12 = vld [vmem:[#allocation5 + $0x8] sm:$0xff]  ;;  %vm96_vm1 = vcmask 1041408   ;;  %s728_s12 = scalar_lea.hbm %s882_s2, 16 }
  0x28   :  { %v57_v5 = vunpack.c.0.s8 %v56_v2  ;;  %v50_v13 = vmul.f32 %v801_v9, %v801_v9  ;;  %v51_v14 = vmul.f32 %v805_v12, %v805_v12  ;;  %v230_v22 = vcombine.high %v47_v7, %v47_v7  ;;  %p729_p2 = scmp.ne.s32.totalorder %s882_s2, %s728_s12  ;;  %p732_p3 = scmp.lt.u32.totalorder %s728_s12, %s882_s2 }
  0x29   :  { %v122_v15 = vcombine.high %v118_v10, %v118_v10  ;;  %v139_v17 = vcombine.high %v119_v11, %v119_v11  ;;  %v186_v61 = vcombine.high %v801_v9, %v801_v9  ;;  %v247_v62 = vcombine.high %v799_v8, %v799_v8 }
  0x2a   :  { %v797_v6 = vsub.s32 %v57_v5, %v790_v3  ;;  %v54_v19 = vcombine.high %v50_v13, %v50_v13  ;;  %v71_v26 = vcombine.high %v51_v14, %v51_v14  ;;  %vm40_vm2 = vcmask 9216   ;;  %p734_p4 = pnand %p732_p3, %p729_p2 }
  0x2b   :  { %41 = vst.msk [vmem:[#allocation2] sm:$0x3] %vm40_vm2, %v747_v4 }
  0x2c   :  { %v129_v16 = vrot.slane %v118_v10, %v797_v6  ;;  %v146_v18 = vrot.slane %v119_v11, %v797_v6  ;;  %v61_v20 = vrot.slane %v50_v13, %v797_v6  ;;  %v237_v21 = vrot.slane %v47_v7, %v797_v6 }
  0x2d   :  { %v136_v23 = vrot.slane %v122_v15, %v797_v6  ;;  %v153_v25 = vrot.slane %v139_v17, %v797_v6  ;;  %v68_v28 = vrot.slane %v54_v19, %v797_v6  ;;  %v78_v30 = vrot.slane %v51_v14, %v797_v6 }
  0x2e   :  { %v137_v24 = vcombine.high %v129_v16, %v129_v16  ;;  %v164_v27 = vsel %vm96_vm1, %v129_v16, 0.0  ;;  %v69_v29 = vcombine.high %v61_v20, %v61_v20  ;;  %v154_v32 = vcombine.high %v146_v18, %v146_v18 }
  0x2f   :  { %v138_v31 = vcombine.high %v136_v23, %v136_v23  ;;  %v167_v34 = vsel %vm96_vm1, %v136_v23, 0.0  ;;  %v70_v36 = vcombine.high %v68_v28, %v68_v28  ;;  %v193_v37 = vrot.slane %v801_v9, %v797_v6 }
  0x30   :  { %v165_v33 = vsel %vm96_vm1, %v137_v24, 0.0  ;;  %v254_v38 = vrot.slane %v799_v8, %v797_v6  ;;  %v155_v39 = vcombine.high %v153_v25, %v153_v25  ;;  %v171_v41 = vsel %vm96_vm1, %v146_v18, 0.0 }
  0x31   :  { %v166_v35 = vadd.f32 %v165_v33, %v164_v27  ;;  %v169_v40 = vsel %vm96_vm1, %v138_v31, 0.0  ;;  %v85_v42 = vrot.slane %v71_v26, %v797_v6  ;;  %v97_v44 = vsel %vm96_vm1, %v61_v20, 0.0 }
  0x32   :  { %v98_v45 = vsel %vm96_vm1, %v69_v29, 0.0  ;;  %v100_v46 = vsel %vm96_vm1, %v68_v28, 0.0  ;;  %v173_v47 = vsel %vm96_vm1, %v154_v32, 0.0  ;;  %v175_v48 = vsel %vm96_vm1, %v153_v25, 0.0  ;;  %v49_v28 = vld [vmem:[#allocation3] sm:$0x3] }
  0x33   :  { %v168_v43 = vadd.f32 %v167_v34, %v166_v35  ;;  %v86_v49 = vcombine.high %v78_v30, %v78_v30  ;;  %v99_v50 = vadd.f32 %v98_v45, %v97_v44  ;;  %v87_v52 = vcombine.high %v85_v42, %v85_v42 }
  0x34   :  { %v102_v53 = vsel %vm96_vm1, %v70_v36, 0.0  ;;  %v245_v54 = vcombine.high %v237_v21, %v237_v21  ;;  %v104_v56 = vsel %vm96_vm1, %v78_v30, 0.0  ;;  %v244_v57 = vrot.slane %v230_v22, %v797_v6 }
  0x35   :  { %v170_v51 = vadd.f32 %v169_v40, %v168_v43  ;;  %v101_v55 = vadd.f32 %v100_v46, %v99_v50  ;;  %v201_v58 = vcombine.high %v193_v37, %v193_v37  ;;  %v262_v60 = vcombine.high %v254_v38, %v254_v38 }
  0x36   :  { %272 = vmatprep.subr.mxu0 %v245_v54  ;;  %v106_v1 = vsel %vm96_vm1, %v86_v49, 0.0  ;;  %v246_v2 = vcombine.high %v244_v57, %v244_v57  ;;  %v210_v5 = vrot.slane %v805_v12, %v797_v6  ;;  %v200_v10 = vrot.slane %v186_v61, %v797_v6 }
  0x37   :  { %v172_v59 = vadd.f32 %v171_v41, %v170_v51  ;;  %v103_v63 = vadd.f32 %v102_v53, %v101_v55  ;;  %273 = vmatpush1.xpose.msra.mxu0 %v237_v21  ;;  %336 = vmatprep.mubr.f32.mxu0 %v201_v58  ;;  %v261_v11 = vrot.slane %v247_v62, %v797_v6  ;;  %v177_v8 = vsel %vm96_vm1, %v155_v39, 0.0 }
  0x38   :  { %412 = vmatprep.subr.mxu0 %v262_v60  ;;  %v203_v9 = vcombine.high %v805_v12, %v805_v12  ;;  %342 = vmatprep.subr.mxu1 %v246_v2  ;;  %v218_v14 = vcombine.high %v210_v5, %v210_v5  ;;  %v108_v16 = vsel %vm96_vm1, %v85_v42, 0.0  ;;  %v202_v17 = vcombine.high %v200_v10, %v200_v10 }
  0x39   :  { %v174_v7 = vadd.f32 %v173_v47, %v172_v59  ;;  %v105_v13 = vadd.f32 %v104_v56, %v103_v63  ;;  %343 = vmatpush1.xpose.msra.mxu1 %v244_v57  ;;  %v263_v18 = vcombine.high %v261_v11, %v261_v11  ;;  %v110_v12 = vsel %vm96_vm1, %v87_v52, 0.0  ;;  %v183_v52 = vld [vmem:[#allocation2] sm:$0x3] }
  0x3a   :  { %337 = vmatmul.mubr.f32.vlgmr.msra.gmra.mrb[0].mxu0 %v193_v37  ;;  %v217_v20 = vrot.slane %v203_v9, %v797_v6  ;;  %406 = vmatprep.mubr.f32.mxu1 %v202_v17  ;;  %v748_v25 = vmov 0   ;;  %v117_v6 = vld [vmem:[#allocation4] sm:$0x3]  ;;  %v561_v57 = vand.u32 127, %v58_v0 }
  0x3b   :  { %v176_v15 = vadd.f32 %v175_v48, %v174_v7  ;;  %v107_v19 = vadd.f32 %v106_v1, %v105_v13  ;;  %413 = vmatpush1.xpose.msra.mxu0 %v254_v38  ;;  %476 = vmatprep.mubr.f32.mxu0 %v218_v14 }
  0x3c   :  { %482 = vmatprep.subr.mxu1 %v263_v18  ;;  %407 = vmatmul.mubr.f32.vlgmr.msra.gmra.mrb[0].mxu1 %v200_v10  ;;  %v219_v23 = vcombine.high %v217_v20, %v217_v20  ;;  %vm562_vm7 = vcmp.eq.s32.totalorder %v790_v3, %v561_v57 }
  0x3d   :  { %v178_v21 = vadd.f32 %v177_v8, %v176_v15  ;;  %v109_v22 = vadd.f32 %v108_v16, %v107_v19  ;;  %483 = vmatpush1.xpose.msra.mxu1 %v261_v11  ;;  %668 = vset.pattern.permute.xlu1 %v748_v25 }
  0x3e   :  { %477 = vmatmul.mubr.f32.vlgmr.msra.gmra.mrb[2].mxu0 %v210_v5  ;;  %546 = vmatprep.mubr.f32.mxu1 %v219_v23 }
  0x3f   :  { %179 = vadd.xlane.f32.xlu0 %v178_v21  ;;  %v111_v24 = vadd.f32 %v110_v12, %v109_v22 }
  0x40   :  { %547 = vmatmul.mubr.f32.vlgmr.msra.gmra.mrb[2].mxu1 %v217_v20  ;;  %669 = vset.pattern.permute.xlu0 %v748_v25 }
  0x43   :  { %112 = vadd.xlane.f32.xlu0 %v111_v24 }
  0xcc   :  { %v180_v26 = vpop.xlane.xlu0 %179 }
  0xcd   :  { %v181_v27 = vadd.f32 %v180_v26, %v117_v6 }
  0xcf   :  { %182 = vst.msk [vmem:[#allocation4] sm:$0x3] %vm42_vm0, %v181_v27 }
  0xd0   :  { %v113_v29 = vpop.xlane.xlu0 %112 }
  0xd1   :  { %v114_v30 = vadd.f32 %v113_v29, %v49_v28 }
  0xd3   :  { %116 = vst.msk [vmem:[#allocation3] sm:$0x3] %vm42_vm0, %v114_v30 }
  0xd6   :  { %v572_v31 = vld [vmem:[#allocation4] sm:$0x3] }
  0xd7   :  { %674 = vrsqrt.f32 %v572_v31  ;;  %vm575_vm3 = vcmp.eq.f32.partialorder %v572_v31, inf  ;;  %v578_v35 = vand.u32 2147483648, %v572_v31  ;;  %vm577_vm4 = vcmp.eq.f32.partialorder %v572_v31, 0.0 }
  0xda   :  { %v563_v32 = vld [vmem:[#allocation3] sm:$0x3] }
  0xdb   :  { %676 = vrsqrt.f32 %v563_v32  ;;  %vm566_vm5 = vcmp.eq.f32.partialorder %v563_v32, inf  ;;  %v569_v40 = vand.u32 2147483648, %v563_v32  ;;  %vm568_vm6 = vcmp.eq.f32.partialorder %v563_v32, 0.0 }
  0xe1   :  { %v675_v33 = vpop.eup %674 }
  0xe2   :  { %v574_v34 = vmul.f32 %v675_v33, %v572_v31 }
  0xe4   :  { %v576_v36 = vsel %vm575_vm3, %v572_v31, %v574_v34 }
  0xe5   :  { %v677_v4 = vpop.eup %676  ;;  %v579_v37 = vsel %vm577_vm4, %v578_v35, %v576_v36 }
  0xe6   :  { %v580_v38 = vadd.f32 1e-10, %v579_v37  ;;  %v565_v39 = vmul.f32 %v677_v4, %v563_v32 }
  0xe8   :  { %583 = vperm.xlu1 %668, %v580_v38   ;;  %v567_v41 = vsel %vm566_vm5, %v563_v32, %v565_v39 }
  0xe9   :  { %v570_v42 = vsel %vm568_vm6, %v569_v40, %v567_v41 }
  0xea   :  { %v571_v43 = vadd.f32 1e-10, %v570_v42 }
  0xec   :  { %597 = vperm.xlu1 %668, %v571_v43  }
 0x10d   :  { %v338_v44 = vpop.f32.mrb[0].mxu0 }
 0x10e   :  { %v340_v45 = vpop.f32.mrb[1].mxu0 }
 0x10f   :  { %v408_v46 = vpop.f32.mrb[0].mxu1 }
 0x110   :  { %v409_v47 = vadd.f32 %v408_v46, %v338_v44  ;;  %v410_v48 = vpop.f32.mrb[1].mxu1 }
 0x111   :  { %v478_v49 = vpop.f32.mrb[2].mxu0 }
 0x112   :  { %v479_v50 = vadd.f32 %v478_v49, %v409_v47  ;;  %v480_v51 = vpop.f32.mrb[3].mxu0 }
 0x113   :  { %v548_v53 = vpop.f32.mrb[2].mxu1 }
 0x114   :  { %v549_v54 = vadd.f32 %v548_v53, %v479_v50  ;;  %v550_v55 = vpop.f32.mrb[3].mxu1 }
 0x116   :  { %v552_v56 = vadd.f32 %v549_v54, %v183_v52 }
 0x118   :  { %554 = vst.msk [vmem:[#allocation2] sm:$0x3] %vm40_vm2, %v552_v56 }
 0x11f   :  { %v594_v9 = vld [vmem:[#allocation2] sm:$0x3] }
 0x167   :  { %v584_v58 = vpop.permute.xlu1 %583 }
 0x168   :  { %v586_v59 = vsel %vm562_vm7, %v584_v58, 0.0 }
 0x169   :  { %v587_v60 = vsel %vm40_vm2, %v586_v59, 0.0 }
 0x16a   :  { %v588_v61 = vrot.slane %v587_v60, 4 }
 0x16b   :  { %v598_v7 = vpop.permute.xlu1 %597 }
 0x16c   :  { %v589_v62 = vadd.f32 %v588_v61, %v587_v60 }
 0x16e   :  { %v590_v63 = vrot.slane %v589_v62, 2 }
 0x170   :  { %v591_v1 = vadd.f32 %v590_v63, %v589_v62 }
 0x172   :  { %v592_v2 = vrot.slane %v591_v1, 1 }
 0x174   :  { %v593_v5 = vadd.f32 %v592_v2, %v591_v1 }
 0x176   :  { %v600_v10 = vmul.f32 %v598_v7, %v593_v5 }
 0x178   :  { %678 = vrcp.f32 %v600_v10 }
 0x182   :  { %v679_v11 = vpop.eup %678 }
 0x183   :  { %v602_v0 = vmul.f32 %v679_v11, %v594_v9 }
 0x185   :  { %v603_v8 = vsel %vm562_vm7, %v602_v0, 0.0  ;;  %v617_v13 = vmul.f32 1.442695, %v602_v0 }
 0x186   :  { %v604_v14 = vsel %vm40_vm2, %v603_v8, 0.0 }
 0x187   :  { %680 = vpow2.f32 %v617_v13  ;;  %605 = vadd.xlane.f32.xlu0 %v604_v14 }
 0x191   :  { %v681_v15 = vpop.eup %680 }
 0x192   :  { %v619_v16 = vsel %vm562_vm7, 1.0, %v681_v15 }
 0x193   :  { %v620_v17 = vsel %vm40_vm2, %v619_v16, 0.0 }
 0x194   :  { %621 = vadd.xlane.f32.xlu1 %v620_v17 }
 0x214   :  { %v606_v18 = vpop.xlane.xlu0 %605 }
 0x215   :  { %v607_v19 = vrot.slane %v606_v18, 4 }
 0x217   :  { %v608_v20 = vadd.f32 %v607_v19, %v606_v18 }
 0x219   :  { %v609_v21 = vrot.slane %v608_v20, 2 }
 0x21b   :  { %v610_v12 = vadd.f32 %v609_v21, %v608_v20 }
 0x21d   :  { %v611_v22 = vrot.slane %v610_v12, 1 }
 0x21f   :  { %v612_v23 = vadd.f32 %v611_v22, %v610_v12 }
 0x221   :  { %v622_v24 = vpop.xlane.xlu1 %621  ;;  %656 = vpush %v612_v23 }
 0x222   :  { %v623_v25 = vrot.slane %v622_v24, 4 }
 0x224   :  { %v624_v6 = vadd.f32 %v623_v25, %v622_v24 }
 0x226   :  { %v625_v26 = vrot.slane %v624_v6, 2 }
 0x228   :  { %v626_v27 = vadd.f32 %v625_v26, %v624_v6 }
 0x22a   :  { %v627_v28 = vrot.slane %v626_v27, 1 }
 0x22c   :  { %v628_v29 = vadd.f32 %v627_v28, %v626_v27 }
 0x22e   :  { %658 = vpush %v628_v29 }
 0x252   :  { %s657_s1 = spop %656 }
 0x253   :  { %s616_s6 = smul.f32 0.25, %s657_s1 }
 0x25f   :  { %s659_s4 = spop %658 }
 0x260   :  { %s632_s5 = smul.f32 0.25, %s659_s4 }
 0x262   :  { %v633_v3 = vstv %s632_s5 }
 0x263   :  { %682 = vlog2.f32 %v633_v3 }
 0x26d   :  { %v683_v30 = vpop.eup %682 }
 0x26e   :  { %v635_v31 = vmul.f32 0.6931472, %v683_v30 }
 0x270   :  { %660 = vpush %v635_v31 }
 0x2a1   :  { %s661_s7 = spop %660 }
 0x2a2   :  { %s637_s8 = ssub.f32 %s616_s6, %s661_s7 }
 0x2a4   :  { %s638_s9 = ssub.f32 0.0, %s637_s8 }
 0x2a6   :  { %640 = sst [smem:[#allocation10]] %s638_s9 }
 0x2a7   :  { %737 = shalt.err (!%p734_p4)
}
 0x2a8   :  { %s749_s17 = smov [#allocation10]  }
 0x2a9   :  { %648 = dma.smem_to_hbm %s749_s17, 16, %s882_s2, [#allocation7]  }
 0x2aa   :  { %742 = dma.done.wait [#allocation7], 16  }
 0x2ab   :  { %743 = vsyncadd [#allocation7], 4294967280 }
 0x2ac   :  { %652 = sfence }
 0x2ad   :  { %653 = vsyncpa [#allocation6], 1 }
 0x2ae   :  { %654 = vsyncpa [#allocation9], 1 }
 0x2af   :  { %655 = vsyncpa [#allocation7], 1 }

</bundles_post_ra>
